<compile_context>
chip_gen: v6e
topology: v6e:2x2x1
jax: 0.10.0
libtpu: 0.0.40
codegen_flags: <defaults>
</compile_context>

<pallas_src>
import functools

import jax
import jax.numpy as jnp
from jax.experimental import pallas as pl
from jax.experimental.pallas import tpu as pltpu

# MXU operand dtype (accumulation is always f32). Set to jnp.float32 for exact parity.
COMPUTE_DTYPE = jnp.bfloat16
LANE = 128
VMEM_LIMIT = 32 * 1024 * 1024   # explicit scoped-VMEM budget (v5e default is only 16 MiB)


def _round_up(x, m):
    return ((x + m - 1) // m) * m


# ---------------------------------------------------------------------------
# Kernel 1: tiled projection  y = x2d @ w + b  over the flattened (T*N) rows.
# Used for (a) the layer-0 input-gate pre-projection and (b) the hoisted vocab
# projection. Row tiles pack many timesteps per MXU matmul; column tiles keep
# the (padded, lane-dense) weight/output blocks within VMEM.
# ---------------------------------------------------------------------------
def _proj_kernel(x_ref, w_ref, b_ref, o_ref):
    o_ref[...] = (jnp.dot(x_ref[...], w_ref[...],
                          preferred_element_type=jnp.float32)
                  + b_ref[...]).astype(o_ref.dtype)


def _time_parallel_projection(x, w, b, *, out_dtype=jnp.float32,
                              compute_dtype=COMPUTE_DTYPE,
                              row_tile=256, col_tile=2048):
    """x: (T, N, Din) -> (T, N, Dout)."""
    T, N, Din = x.shape
    Dout = w.shape[1]
    M = T * N

    Tm = min(row_tile, _round_up(M, 8))          # packed-timestep row tile
    Mp = _round_up(M, Tm)
    Tv = min(col_tile, _round_up(Dout, LANE))    # lane-aligned output-column tile
    Dp = _round_up(Dout, Tv)

    x2 = x.reshape(M, Din).astype(compute_dtype)
    if Mp != M:
        x2 = jnp.concatenate([x2, jnp.zeros((Mp - M, Din), compute_dtype)], axis=0)
    w_c = w.astype(compute_dtype)
    b_c = b.reshape(1, Dout).astype(jnp.float32)
    if Dp != Dout:
        w_c = jnp.concatenate([w_c, jnp.zeros((Din, Dp - Dout), compute_dtype)], axis=1)
        b_c = jnp.concatenate([b_c, jnp.zeros((1, Dp - Dout), jnp.float32)], axis=1)

    out = pl.pallas_call(
        _proj_kernel,
        out_shape=jax.ShapeDtypeStruct((Mp, Dp), out_dtype),
        grid_spec=pltpu.PrefetchScalarGridSpec(
            num_scalar_prefetch=0,
            grid=(Mp // Tm, Dp // Tv),
            in_specs=[
                pl.BlockSpec((Tm, Din), lambda i, j: (i, 0)),
                pl.BlockSpec((Din, Tv), lambda i, j: (0, j)),
                pl.BlockSpec((1, Tv), lambda i, j: (0, j)),
            ],
            out_specs=pl.BlockSpec((Tm, Tv), lambda i, j: (i, j)),
        ),
        compiler_params=pltpu.CompilerParams(
            dimension_semantics=("parallel", "parallel"),   # megacore on v7x
            vmem_limit_bytes=VMEM_LIMIT),
    )(x2, w_c, b_c)
    return out[:M, :Dout].reshape(T, N, Dout)


# ---------------------------------------------------------------------------
# Kernel 2: the serial GRU recurrence, streamed over time chunks.
# Hidden states persist across chunks in a VMEM scratch; only the last layer's
# hidden is written out per step (the vocab projection happens outside).
# ---------------------------------------------------------------------------
def _gru_recurrent_kernel(n_layers, chunk_len, hidden_size, compute_dtype,
                          xg0_ref,   # (Tc, Nb, 3H) f32: layer-0 input gates (incl. b_i[0])
                          h0_ref,    # (L,  Nb, H)  f32: initial hidden states
                          wi_ref,    # (max(L-1,1), H, 3H) compute dtype (layers 1..L-1)
                          bi_ref,    # (max(L-1,1), 1, 3H) f32
                          wh_ref,    # (L, H, 3H) compute dtype
                          bh_ref,    # (L, 1, 3H) f32
                          hout_ref,  # (Tc, Nb, H) bf16: last layer's hidden per step
                          h_scr):    # VMEM scratch (L, Nb, H) f32, persists across chunks
    H = hidden_size
    L = n_layers
    Nb = h0_ref.shape[1]

    @pl.when(pl.program_id(1) == 0)          # first time-chunk of this batch slice
    def _():
        h_scr[...] = h0_ref[...]

    # Hoist bias broadcasts out of the time loop (JAX does not CSE broadcast_in_dim).
    bh = [jnp.broadcast_to(bh_ref[l], (Nb, 3 * H)) for l in range(L)]
    bi = [jnp.broadcast_to(bi_ref[l - 1], (Nb, 3 * H)) for l in range(1, L)]

    def step(t, carry):
        del carry
        h_old = [h_scr[l] for l in range(L)]
        # Issue ALL hidden-to-hidden matmuls up front: they only depend on the t-1
        # hidden states, so layer l+1's MXU work overlaps layer l's sigmoid/tanh.
        gh = [jnp.dot(h_old[l].astype(compute_dtype), wh_ref[l],
                      preferred_element_type=jnp.float32) + bh[l]
              for l in range(L)]
        prev = None
        for l in range(L):                    # static unroll over layers
            if l == 0:
                gx = xg0_ref[t]               # input gates precomputed outside
            else:
                gx = (jnp.dot(prev.astype(compute_dtype), wi_ref[l - 1],
                              preferred_element_type=jnp.float32) + bi[l - 1])
            # PyTorch GRUCell, gate order [r | z | n]; fused r/z sigmoid over 2H lanes.
            rz = jax.nn.sigmoid(gx[:, :2 * H] + gh[l][:, :2 * H])
            r, z = rz[:, :H], rz[:, H:]
            n = jnp.tanh(gx[:, 2 * H:] + r * gh[l][:, 2 * H:])
            h_new = (1.0 - z) * n + z * h_old[l]
            # nn.Dropout(0.2) == identity in eval mode.
            h_scr[l] = h_new
            prev = h_new
        hout_ref[t] = prev.astype(hout_ref.dtype)
        return 0

    # TODO(synk): bf16 sigmoid/tanh on v6e/v7x would halve the EUP-bound gate cost;
    # kept f32 here for cross-generation numerical parity (v5e has no bf16 EUP path).
    jax.lax.fori_loop(0, chunk_len, step, 0, unroll=True)


def _gru_recurrence(xg0, h0, params, *, time_chunk=4,
                    compute_dtype=COMPUTE_DTYPE, single_buffer_weights=True):
    T, N, threeH = xg0.shape
    L, _, H = h0.shape

    # Stream time through the kernel in chunks: VMEM only holds (Tc,N,3H)+(Tc,N,H)
    # per buffer instead of the full-T tensors.
    Tc = min(time_chunk, T)
    Tp = _round_up(T, Tc)
    if Tp != T:
        xg0 = jnp.concatenate(
            [xg0, jnp.zeros((Tp - T, N, threeH), xg0.dtype)], axis=0)

    # Optional leading "parallel" batch-split axis: v7x's two TensorCores each run an
    # independent recurrence on half the batch (only when the half is sublane-aligned).
    nb = 2 if (N % 2 == 0 and (N // 2) % 8 == 0) else 1
    Nb = N // nb

    w_h = params["w_h"].astype(compute_dtype)
    b_h = params["b_h"].astype(jnp.float32)
    if L > 1:
        w_i = params["w_i"][1:].astype(compute_dtype)   # layer-0 slot not shipped
        b_i = params["b_i"][1:].astype(jnp.float32)
    else:
        w_i = jnp.zeros((1, H, threeH), compute_dtype)  # never read when L == 1
        b_i = jnp.zeros((1, 1, threeH), jnp.float32)
    Lw = w_i.shape[0]

    # Grid-invariant weights/biases: single-buffer (halves their VMEM footprint).
    inv = dict(pipeline_mode=pl.Buffered(1)) if single_buffer_weights else {}

    kernel = functools.partial(_gru_recurrent_kernel, L, Tc, H, compute_dtype)
    hout = pl.pallas_call(
        kernel,
        out_shape=jax.ShapeDtypeStruct((Tp, N, H), jnp.bfloat16),
        grid_spec=pltpu.PrefetchScalarGridSpec(
            num_scalar_prefetch=0,
            grid=(nb, Tp // Tc),
            in_specs=[
                pl.BlockSpec((Tc, Nb, threeH), lambda b, c: (c, b, 0)),
                pl.BlockSpec((L, Nb, H), lambda b, c: (0, b, 0)),
                pl.BlockSpec((Lw, H, threeH), lambda b, c: (0, 0, 0), **inv),
                pl.BlockSpec((Lw, 1, threeH), lambda b, c: (0, 0, 0), **inv),
                pl.BlockSpec((L, H, threeH), lambda b, c: (0, 0, 0), **inv),
                pl.BlockSpec((L, 1, threeH), lambda b, c: (0, 0, 0), **inv),
            ],
            out_specs=pl.BlockSpec((Tc, Nb, H), lambda b, c: (c, b, 0)),
            scratch_shapes=[pltpu.VMEM((L, Nb, H), jnp.float32)],
        ),
        compiler_params=pltpu.CompilerParams(
            dimension_semantics=("parallel", "arbitrary"),
            vmem_limit_bytes=VMEM_LIMIT),
    )(xg0, h0, w_i, b_i, w_h, b_h)
    return hout[:T]


# ---------------------------------------------------------------------------
# Glue (plain JAX): feature extraction stand-in, embedding lookup, sequence build.
# ---------------------------------------------------------------------------
def _extract_features(params, images):
    # TODO(synk): the pretrained ResNet18 trunk of FeatureExtractor cannot be reproduced
    # here; stand-in = global average pool + deterministic linear projection to E.
    pooled = jnp.mean(images, axis=(2, 3))                       # (B, C)
    return pooled @ params["feat_proj"] + params["feat_bias"]    # (B, E)


def _build_inputs(params, images, indices):
    B, NC, W = indices.shape
    H = params["hidden_size"]
    L = params["n_layers"]
    features = _extract_features(params, images)                 # (B, E); E == H
    N = B * NC

    # init_hidden: expand along dim 0 then view -> caption-major replication (row c*B+b).
    h0_layer0 = jnp.tile(features, (NC, 1))
    h_rest = jnp.zeros((L - 1, N, H), jnp.float32)
    h0 = jnp.concatenate([h0_layer0[None], h_rest], axis=0)      # (L, N, H)

    # Step-0 token: features replicated batch-major (row b*NC+c).
    feat_tok = jnp.repeat(features, NC, axis=0)
    idx_flat = indices.reshape(N, W)
    embeds = params["embedding"][idx_flat]                       # (N, W, E)
    x = jnp.concatenate([feat_tok[None], jnp.transpose(embeds, (1, 0, 2))],
                        axis=0)                                  # (T=W+1, N, E)
    return x, h0


def gru_annotator_forward(params, images, indices, *, single_buffer_weights=True):
    x, h0 = _build_inputs(params, images, indices)               # (T,N,E), (L,N,H)
    # 1) layer-0 input gates for all timesteps (time-packed rows, tiled gate columns).
    xg0 = _time_parallel_projection(x, params["w_i"][0], params["b_i"][0])   # (T,N,3H)
    # 2) serial recurrence, streamed over time chunks (hidden state in VMEM scratch).
    hidden = _gru_recurrence(xg0, h0, params,
                             single_buffer_weights=single_buffer_weights)    # (T,N,H) bf16
    # 3) hoisted vocab projection (time-packed rows, tiled vocab columns).
    logits = _time_parallel_projection(hidden, params["w_out"], params["b_out"])  # (T,N,V)
    return jnp.transpose(logits, (1, 2, 0))                      # (N, V, T)


# ---------------------------------------------------------------------------
# Pure-JAX reference (correctness check only).
# ---------------------------------------------------------------------------
def _reference_forward(params, images, indices):
    x, h0 = _build_inputs(params, images, indices)
    T, N, _ = x.shape
    L = params["n_layers"]
    H = params["hidden_size"]
    hi = jax.lax.Precision.HIGHEST
    h = [h0[l] for l in range(L)]
    outs = []
    for t in range(T):
        inp = x[t]
        for l in range(L):
            gx = jnp.dot(inp, params["w_i"][l], precision=hi) + params["b_i"][l]
            gh = jnp.dot(h[l], params["w_h"][l], precision=hi) + params["b_h"][l]
            r = jax.nn.sigmoid(gx[:, :H] + gh[:, :H])
            z = jax.nn.sigmoid(gx[:, H:2 * H] + gh[:, H:2 * H])
            n = jnp.tanh(gx[:, 2 * H:] + r * gh[:, 2 * H:])
            h[l] = (1.0 - z) * n + z * h[l]
            inp = h[l]
        outs.append(jnp.dot(inp, params["w_out"], precision=hi) + params["b_out"])
    return jnp.transpose(jnp.stack(outs), (1, 2, 0))


# ---------------------------------------------------------------------------
# Deterministic parameter init (fused GRUCell layout, gate order [r | z | n]).
# ---------------------------------------------------------------------------
def init_params(key, vocab_size, embedding_size, hidden_size, n_layers, in_channels):
    assert embedding_size == hidden_size, "GRUAnnotator requires E == H"
    L, E, H, V = n_layers, embedding_size, hidden_size, vocab_size
    keys = jax.random.split(key, 8)
    bound = 1.0 / float(H) ** 0.5

    def u(k, shape):
        return jax.random.uniform(k, shape, jnp.float32, -bound, bound)

    return dict(
        n_layers=n_layers,
        hidden_size=hidden_size,
        embedding=jax.random.normal(keys[0], (V, E), jnp.float32),
        feat_proj=jax.random.normal(keys[1], (in_channels, E), jnp.float32) * 0.1,
        feat_bias=jnp.zeros((E,), jnp.float32),
        w_i=u(keys[2], (L, E, 3 * H)),     # [w_ir | w_iz | w_in]
        w_h=u(keys[3], (L, H, 3 * H)),     # [w_hr | w_hz | w_hn]
        b_i=u(keys[4], (L, 1, 3 * H)),     # [b_ir | b_iz | b_in]
        b_h=u(keys[5], (L, 1, 3 * H)),     # [b_hr | b_hz | b_hn]
        w_out=u(keys[6], (H, V)),
        b_out=u(keys[7], (1, V)),
    )


if __name__ == "__main__":
    key = jax.random.PRNGKey(0)
    kp, ki, kx = jax.random.split(key, 3)

    B, NC, W = 2, 2, 7          # batch, captions per image, words per caption
    C, Hs, Ws = 3, 16, 16       # image NCHW
    E = H = 32                  # embedding_size == hidden_size
    L = 2                       # n_layers
    V = 32                      # vocab_size

    params = init_params(kp, V, E, H, L, C)
    images = jax.random.normal(kx, (B, C, Hs, Ws), jnp.float32)
    indices = jax.random.randint(ki, (B, NC, W), 0, V, dtype=jnp.int32)

    fwd = functools.partial(gru_annotator_forward, params, images, indices)
    try:
        caption = jax.block_until_ready(fwd())
    except Exception:
        # Compatibility fallback: if this jax build rejects pl.Buffered(1)
        # (single-buffered grid-invariant weights), rerun with default buffering.
        caption = jax.block_until_ready(fwd(single_buffer_weights=False))
    assert caption.shape == (B * NC, V, W + 1), caption.shape

    ref = jax.block_until_ready(_reference_forward(params, images, indices))
    if not jnp.allclose(caption, ref, atol=5e-2, rtol=5e-2):
        err = float(jnp.max(jnp.abs(caption - ref)))
        raise AssertionError(
            f"Pallas kernel output mismatch vs JAX reference (max abs err {err})")

    print("KERNEL_OK")
</pallas_src>

<mosaic_0001>
module attributes {stable_mosaic.version = 11 : i64} {
  func.func @_proj_kernel(%arg0: i32, %arg1: i32, %arg2: memref<32x32xbf16, #tpu.memory_space<vmem>>, %arg3: memref<32x128xbf16, #tpu.memory_space<vmem>>, %arg4: memref<1x128xf32, #tpu.memory_space<vmem>>, %arg5: memref<32x128xf32, #tpu.memory_space<vmem>>) attributes {dimension_semantics = [#tpu.dimension_semantics<parallel>, #tpu.dimension_semantics<parallel>], iteration_bounds = array<i64: 1, 1>, scalar_prefetch = 0 : i64, scratch_operands = 0 : i64, tpu.core_type = #tpu.core_type<tc>, window_params = [{transform_indices = @transform_0, window_bounds = array<i64: 32, 32>}, {transform_indices = @transform_1, window_bounds = array<i64: 32, 128>}, {transform_indices = @transform_2, window_bounds = array<i64: 1, 128>}, {transform_indices = @transform_3, window_bounds = array<i64: 32, 128>}]} {
    %c0 = arith.constant 0 : index
    %c0_0 = arith.constant 0 : index
    %0 = vector.load %arg2[%c0, %c0_0] : memref<32x32xbf16, #tpu.memory_space<vmem>>, vector<32x32xbf16>
    %c0_1 = arith.constant 0 : index
    %c0_2 = arith.constant 0 : index
    %1 = vector.load %arg3[%c0_1, %c0_2] : memref<32x128xbf16, #tpu.memory_space<vmem>>, vector<32x128xbf16>
    %cst = arith.constant dense<0.000000e+00> : vector<32x128xf32>
    %2 = tpu.matmul %0, %1, %cst {dimension_numbers = #tpu.dot_dimension_numbers<[1], [0], [0], [1], [0, 0, 1, 1], [], []>} : vector<32x32xbf16>, vector<32x128xbf16>, vector<32x128xf32> -> vector<32x128xf32>
    %c0_3 = arith.constant 0 : index
    %c0_4 = arith.constant 0 : index
    %3 = vector.load %arg4[%c0_3, %c0_4] : memref<1x128xf32, #tpu.memory_space<vmem>>, vector<1x128xf32>
    %4 = vector.broadcast %3 : vector<1x128xf32> to vector<32x128xf32>
    %5 = arith.addf %2, %4 : vector<32x128xf32>
    %c0_5 = arith.constant 0 : index
    %c0_6 = arith.constant 0 : index
    %6 = vector.load %arg5[%c0_5, %c0_6] : memref<32x128xf32, #tpu.memory_space<vmem>>, vector<32x128xf32>
    tpu.vector_store %arg5[%c0_5, %c0_6], %5 {strides = array<i32>} : memref<32x128xf32, #tpu.memory_space<vmem>>, vector<32x128xf32>,
    return
  }
  func.func @transform_0(%arg0: i32, %arg1: i32) -> (i32, i32) {
    %c0_i32 = arith.constant 0 : i32
    %c0_i32_0 = arith.constant 0 : i32
    return %arg0, %c0_i32 : i32, i32
  }
  func.func @transform_1(%arg0: i32, %arg1: i32) -> (i32, i32) {
    %c0_i32 = arith.constant 0 : i32
    %c0_i32_0 = arith.constant 0 : i32
    return %c0_i32, %arg1 : i32, i32
  }
  func.func @transform_2(%arg0: i32, %arg1: i32) -> (i32, i32) {
    %c0_i32 = arith.constant 0 : i32
    %c0_i32_0 = arith.constant 0 : i32
    return %c0_i32, %arg1 : i32, i32
  }
  func.func @transform_3(%arg0: i32, %arg1: i32) -> (i32, i32) {
    %c0_i32 = arith.constant 0 : i32
    return %arg0, %arg1 : i32, i32
  }
}

module attributes {stable_mosaic.version = 11 : i64} {
  func.func @_proj_kernel(%arg0: i32, %arg1: i32, %arg2: memref<32x32xbf16, #tpu.memory_space<vmem>>, %arg3: memref<32x128xbf16, #tpu.memory_space<vmem>>, %arg4: memref<1x128xf32, #tpu.memory_space<vmem>>, %arg5: memref<32x128xf32, #tpu.memory_space<vmem>>) attributes {dimension_semantics = [#tpu.dimension_semantics<parallel>, #tpu.dimension_semantics<parallel>], iteration_bounds = array<i64: 1, 1>, scalar_prefetch = 0 : i64, scratch_operands = 0 : i64, tpu.core_type = #tpu.core_type<tc>, window_params = [{transform_indices = @transform_0, window_bounds = array<i64: 32, 32>}, {transform_indices = @transform_1, window_bounds = array<i64: 32, 128>}, {transform_indices = @transform_2, window_bounds = array<i64: 1, 128>}, {transform_indices = @transform_3, window_bounds = array<i64: 32, 128>}]} {
    %c0 = arith.constant 0 : index
    %c0_0 = arith.constant 0 : index
    %0 = vector.load %arg2[%c0, %c0_0] : memref<32x32xbf16, #tpu.memory_space<vmem>>, vector<32x32xbf16>
    %c0_1 = arith.constant 0 : index
    %c0_2 = arith.constant 0 : index
    %1 = vector.load %arg3[%c0_1, %c0_2] : memref<32x128xbf16, #tpu.memory_space<vmem>>, vector<32x128xbf16>
    %cst = arith.constant dense<0.000000e+00> : vector<32x128xf32>
    %2 = tpu.matmul %0, %1, %cst {dimension_numbers = #tpu.dot_dimension_numbers<[1], [0], [0], [1], [0, 0, 1, 1], [], []>} : vector<32x32xbf16>, vector<32x128xbf16>, vector<32x128xf32> -> vector<32x128xf32>
    %c0_3 = arith.constant 0 : index
    %c0_4 = arith.constant 0 : index
    %3 = vector.load %arg4[%c0_3, %c0_4] : memref<1x128xf32, #tpu.memory_space<vmem>>, vector<1x128xf32>
    %4 = vector.broadcast %3 : vector<1x128xf32> to vector<32x128xf32>
    %5 = arith.addf %2, %4 : vector<32x128xf32>
    %c0_5 = arith.constant 0 : index
    %c0_6 = arith.constant 0 : index
    %6 = vector.load %arg5[%c0_5, %c0_6] : memref<32x128xf32, #tpu.memory_space<vmem>>, vector<32x128xf32>
    tpu.vector_store %arg5[%c0_5, %c0_6], %5 {strides = array<i32>} : memref<32x128xf32, #tpu.memory_space<vmem>>, vector<32x128xf32>,
    return
  }
  func.func @transform_0(%arg0: i32, %arg1: i32) -> (i32, i32) {
    %c0_i32 = arith.constant 0 : i32
    %c0_i32_0 = arith.constant 0 : i32
    return %arg0, %c0_i32 : i32, i32
  }
  func.func @transform_1(%arg0: i32, %arg1: i32) -> (i32, i32) {
    %c0_i32 = arith.constant 0 : i32
    %c0_i32_0 = arith.constant 0 : i32
    return %c0_i32, %arg1 : i32, i32
  }
  func.func @transform_2(%arg0: i32, %arg1: i32) -> (i32, i32) {
    %c0_i32 = arith.constant 0 : i32
    %c0_i32_0 = arith.constant 0 : i32
    return %c0_i32, %arg1 : i32, i32
  }
  func.func @transform_3(%arg0: i32, %arg1: i32) -> (i32, i32) {
    %c0_i32 = arith.constant 0 : i32
    return %arg0, %arg1 : i32, i32
  }
}

</mosaic_0001>

<bundles_post_ra>
// kernel: tpu_custom_call.1
= control target key start
LH: loop header
LB: loop body
LE: loop exit
PB: predicated region body
PF: predicated region fallthrough
CT: control target
= control target key end

     0   :  { %8 = vsyncpa [#allocation3], 0  ;;  %s294_s0 = inlined_call_operand.hbm [shape: bf16[32,32], index: 0, kind: input, shape index: {}]   ;;  %s295_s1 = inlined_call_operand.hbm [shape: bf16[32,128], index: 1, kind: input, shape index: {}]   ;;  %s296_s2 = inlined_call_operand.vmem [shape: f32[1,128], index: 2, kind: input, shape index: {}]   ;;  %s297_s3 = inlined_call_operand.hbm [shape: f32[32,128], index: 3, kind: output, shape index: {}]  }
   0x1   :  { %9 = vsyncpa [#allocation6], 0 }
   0x2   :  { %10 = vsyncpa [#allocation4], 0  ;;  %s255_s12 = smov [#allocation2]  }
   0x3   :  { %s16_s13 = sshll.u32 %s255_s12, 4  ;;  %s17_s13 = int_to_ptr.vmem [resolvable:$true] %s16_s13 }
   0x4   :  { %s197_s14 = scalar_lea.vmem %s17_s13, 256  ;;  %p202_p1 = scmp.lt.s32.totalorder %s17_s13, %s17_s13 }
   0x5   :  { %p198_p0 = scmp.ne.s32.totalorder %s17_s13, %s197_s14  ;;  %p203_p2 = scmp.lt.s32.totalorder %s197_s14, %s197_s14 }
   0x7   :  { %p204_p3 = por %p203_p2, %p202_p1 }
   0x9   :  { %p205_p4 = pnand %p204_p3, %p198_p0 }
   0xb   :  { %208 = shalt.err (!%p205_p4)
}
   0xc   :  { %s256_s15 = smov 64   ;;  %s257_s16 = smov 4  }
   0xd   :  { %22 = dma.hbm_to_vmem [thread:$0]  %s294_s0, 256, %s17_s13, [#allocation3], %s256_s15, %s256_s15, %s257_s16  }
   0xe   :  { %s258_s19 = smov [#allocation5]  }
   0xf   :  { %s28_s20 = sshll.u32 %s258_s19, 4  ;;  %s29_s20 = int_to_ptr.vmem [resolvable:$true] %s28_s20 }
  0x10   :  { %s217_s21 = scalar_lea.vmem %s29_s20, 256  ;;  %p222_p6 = scmp.lt.s32.totalorder %s29_s20, %s29_s20 }
  0x11   :  { %p218_p5 = scmp.ne.s32.totalorder %s29_s20, %s217_s21  ;;  %p223_p7 = scmp.lt.s32.totalorder %s217_s21, %s217_s21 }
  0x13   :  { %p224_p8 = por %p223_p7, %p222_p6 }
  0x15   :  { %p225_p9 = pnand %p224_p8, %p218_p5 }
  0x17   :  { %228 = shalt.err (!%p225_p9)
}
  0x18   :  { %34 = dma.hbm_to_vmem [thread:$0]  %s295_s1, 256, %s29_s20, [#allocation6], %s256_s15, %s256_s15, %s257_s16  }
  0x19   :  { %249 = dma.done.wait [#allocation3], 256  }
  0x1a   :  { %250 = vsyncadd [#allocation3], 4294967040 }
  0x1b   :  { %251 = dma.done.wait [#allocation6], 256  }
  0x1c   :  { %252 = vsyncadd [#allocation6], 4294967040  ;;  %v185_v0 = vld [vmem:[#allocation5 + $0x8] sm:$0xff]   ;;  %v186_v1 = vld [vmem:[#allocation5] sm:$0xff]   ;;  %vm81_vm0 = vcmask 261120   ;;  %s259_s1 = smov [#allocation7]  }
  0x1d   :  { %170 = vmatprep.subr.bf16.mxu0 %v185_v0  ;;  %v187_v2 = vld [vmem:[#allocation2] sm:$0xff]   ;;  %v188_v3 = vld [vmem:[#allocation2 + $0x8] sm:$0xff]   ;;  %s146_s25 = sshll.u32 %s259_s1, 4  ;;  %s147_s25 = int_to_ptr.vmem [resolvable:$true] %s146_s25 }
  0x1e   :  { %171 = vmatpush3.bf16.msra.mxu0 %v185_v0  ;;  %174 = vmatprep.mubr.msk.bf16.mxu0 %vm81_vm0, %v187_v2  ;;  %v159_v4 = vld [vmem:[%s296_s2] ss:$0 sm:$0xff]  ;;  %s229_s26 = scalar_lea.vmem %s147_s25, 512  ;;  %p234_p11 = scmp.lt.s32.totalorder %s147_s25, %s147_s25 }
  0x1f   :  { %172 = vmatprep.subr.bf16.mxu0 %v186_v1  ;;  %p230_p10 = scmp.ne.s32.totalorder %s147_s25, %s229_s26  ;;  %p235_p12 = scmp.lt.s32.totalorder %s229_s26, %s229_s26 }
  0x21   :  { %p236_p13 = por %p235_p12, %p234_p11 }
  0x22   :  { %173 = vmatpush3.bf16.msra.mxu0 %v186_v1 }
  0x23   :  { %p237_p0 = pnand %p236_p13, %p230_p10 }
  0x25   :  { %175 = vmatmul.mubr.msk.bf16.vlgmr.msra.gmra.mxu0 %vm81_vm0, %v188_v3 }
  0xe5   :  { %v176_v5 = vpop.f32.mrf.mxu0 }
  0xe6   :  { %v131_v6 = vadd.f32 %v176_v5, %v159_v4 }
  0xe7   :  { %v122_v7 = vpop.f32.mrf.mxu0 }
  0xe8   :  { %139 = vst [vmem:[#allocation7 + $0x10] sm:$0xff] %v131_v6  ;;  %v123_v8 = vadd.f32 %v159_v4, %v122_v7 }
  0xe9   :  { %v177_v9 = vpop.f32.mrf.mxu0 }
  0xea   :  { %137 = vst [vmem:[#allocation7] sm:$0xff] %v123_v8  ;;  %v134_v10 = vadd.f32 %v177_v9, %v159_v4 }
  0xeb   :  { %v125_v11 = vpop.f32.mrf.mxu0 }
  0xec   :  { %140 = vst [vmem:[#allocation7 + $0x18] sm:$0xff] %v134_v10  ;;  %v126_v12 = vadd.f32 %v159_v4, %v125_v11 }
  0xee   :  { %138 = vst [vmem:[#allocation7 + $0x8] sm:$0xff] %v126_v12 }
  0xef   :  { %240 = shalt.err (!%p237_p0)
}
  0xf0   :  { %s260_s2 = smov 128   ;;  %s261_s27 = smov 8  }
  0xf1   :  { %152 = dma.vmem_to_hbm [thread:$0]  %s147_s25, 512, %s297_s3, [#allocation4], %s260_s2, %s260_s2, %s261_s27  }
  0xf2   :  { %253 = dma.done.wait [#allocation4], 512  }
  0xf3   :  { %254 = vsyncadd [#allocation4], 4294966784 }
  0xf4   :  { %156 = vsyncpa [#allocation3], 1 }
  0xf5   :  { %157 = vsyncpa [#allocation6], 1 }
  0xf6   :  { %158 = vsyncpa [#allocation4], 1 }

// kernel: tpu_custom_call.1
= control target key start
LH: loop header
LB: loop body
LE: loop exit
PB: predicated region body
PF: predicated region fallthrough
CT: control target
= control target key end

     0   :  { %8 = vsyncpa [#allocation3], 0  ;;  %s294_s0 = inlined_call_operand.hbm [shape: bf16[32,32], index: 0, kind: input, shape index: {}]   ;;  %s295_s1 = inlined_call_operand.hbm [shape: bf16[32,128], index: 1, kind: input, shape index: {}]   ;;  %s296_s2 = inlined_call_operand.vmem [shape: f32[1,128], index: 2, kind: input, shape index: {}]   ;;  %s297_s3 = inlined_call_operand.hbm [shape: f32[32,128], index: 3, kind: output, shape index: {}]  }
   0x1   :  { %9 = vsyncpa [#allocation6], 0 }
   0x2   :  { %10 = vsyncpa [#allocation4], 0  ;;  %s255_s12 = smov [#allocation2]  }
   0x3   :  { %s16_s13 = sshll.u32 %s255_s12, 4  ;;  %s17_s13 = int_to_ptr.vmem [resolvable:$true] %s16_s13 }
   0x4   :  { %s197_s14 = scalar_lea.vmem %s17_s13, 256  ;;  %p202_p1 = scmp.lt.s32.totalorder %s17_s13, %s17_s13 }
   0x5   :  { %p198_p0 = scmp.ne.s32.totalorder %s17_s13, %s197_s14  ;;  %p203_p2 = scmp.lt.s32.totalorder %s197_s14, %s197_s14 }
   0x7   :  { %p204_p3 = por %p203_p2, %p202_p1 }
   0x9   :  { %p205_p4 = pnand %p204_p3, %p198_p0 }
   0xb   :  { %208 = shalt.err (!%p205_p4)
}
   0xc   :  { %s256_s15 = smov 64   ;;  %s257_s16 = smov 4  }
   0xd   :  { %22 = dma.hbm_to_vmem [thread:$0]  %s294_s0, 256, %s17_s13, [#allocation3], %s256_s15, %s256_s15, %s257_s16  }
   0xe   :  { %s258_s19 = smov [#allocation5]  }
   0xf   :  { %s28_s20 = sshll.u32 %s258_s19, 4  ;;  %s29_s20 = int_to_ptr.vmem [resolvable:$true] %s28_s20 }
  0x10   :  { %s217_s21 = scalar_lea.vmem %s29_s20, 256  ;;  %p222_p6 = scmp.lt.s32.totalorder %s29_s20, %s29_s20 }
  0x11   :  { %p218_p5 = scmp.ne.s32.totalorder %s29_s20, %s217_s21  ;;  %p223_p7 = scmp.lt.s32.totalorder %s217_s21, %s217_s21 }
  0x13   :  { %p224_p8 = por %p223_p7, %p222_p6 }
  0x15   :  { %p225_p9 = pnand %p224_p8, %p218_p5 }
  0x17   :  { %228 = shalt.err (!%p225_p9)
}
  0x18   :  { %34 = dma.hbm_to_vmem [thread:$0]  %s295_s1, 256, %s29_s20, [#allocation6], %s256_s15, %s256_s15, %s257_s16  }
  0x19   :  { %249 = dma.done.wait [#allocation3], 256  }
  0x1a   :  { %250 = vsyncadd [#allocation3], 4294967040 }
  0x1b   :  { %251 = dma.done.wait [#allocation6], 256  }
  0x1c   :  { %252 = vsyncadd [#allocation6], 4294967040  ;;  %v185_v0 = vld [vmem:[#allocation5 + $0x8] sm:$0xff]   ;;  %v186_v1 = vld [vmem:[#allocation5] sm:$0xff]   ;;  %vm81_vm0 = vcmask 261120   ;;  %s259_s1 = smov [#allocation7]  }
  0x1d   :  { %170 = vmatprep.subr.bf16.mxu0 %v185_v0  ;;  %v187_v2 = vld [vmem:[#allocation2] sm:$0xff]   ;;  %v188_v3 = vld [vmem:[#allocation2 + $0x8] sm:$0xff]   ;;  %s146_s25 = sshll.u32 %s259_s1, 4  ;;  %s147_s25 = int_to_ptr.vmem [resolvable:$true] %s146_s25 }
  0x1e   :  { %171 = vmatpush3.bf16.msra.mxu0 %v185_v0  ;;  %174 = vmatprep.mubr.msk.bf16.mxu0 %vm81_vm0, %v187_v2  ;;  %v159_v4 = vld [vmem:[%s296_s2] ss:$0 sm:$0xff]  ;;  %s229_s26 = scalar_lea.vmem %s147_s25, 512  ;;  %p234_p11 = scmp.lt.s32.totalorder %s147_s25, %s147_s25 }
  0x1f   :  { %172 = vmatprep.subr.bf16.mxu0 %v186_v1  ;;  %p230_p10 = scmp.ne.s32.totalorder %s147_s25, %s229_s26  ;;  %p235_p12 = scmp.lt.s32.totalorder %s229_s26, %s229_s26 }
  0x21   :  { %p236_p13 = por %p235_p12, %p234_p11 }
  0x22   :  { %173 = vmatpush3.bf16.msra.mxu0 %v186_v1 }
  0x23   :  { %p237_p0 = pnand %p236_p13, %p230_p10 }
  0x25   :  { %175 = vmatmul.mubr.msk.bf16.vlgmr.msra.gmra.mxu0 %vm81_vm0, %v188_v3 }
  0xe5   :  { %v176_v5 = vpop.f32.mrf.mxu0 }
  0xe6   :  { %v131_v6 = vadd.f32 %v176_v5, %v159_v4 }
  0xe7   :  { %v122_v7 = vpop.f32.mrf.mxu0 }
  0xe8   :  { %139 = vst [vmem:[#allocation7 + $0x10] sm:$0xff] %v131_v6  ;;  %v123_v8 = vadd.f32 %v159_v4, %v122_v7 }
  0xe9   :  { %v177_v9 = vpop.f32.mrf.mxu0 }
  0xea   :  { %137 = vst [vmem:[#allocation7] sm:$0xff] %v123_v8  ;;  %v134_v10 = vadd.f32 %v177_v9, %v159_v4 }
  0xeb   :  { %v125_v11 = vpop.f32.mrf.mxu0 }
  0xec   :  { %140 = vst [vmem:[#allocation7 + $0x18] sm:$0xff] %v134_v10  ;;  %v126_v12 = vadd.f32 %v159_v4, %v125_v11 }
  0xee   :  { %138 = vst [vmem:[#allocation7 + $0x8] sm:$0xff] %v126_v12 }
  0xef   :  { %240 = shalt.err (!%p237_p0)
}
  0xf0   :  { %s260_s2 = smov 128   ;;  %s261_s27 = smov 8  }
  0xf1   :  { %152 = dma.vmem_to_hbm [thread:$0]  %s147_s25, 512, %s297_s3, [#allocation4], %s260_s2, %s260_s2, %s261_s27  }
  0xf2   :  { %253 = dma.done.wait [#allocation4], 512  }
  0xf3   :  { %254 = vsyncadd [#allocation4], 4294966784 }
  0xf4   :  { %156 = vsyncpa [#allocation3], 1 }
  0xf5   :  { %157 = vsyncpa [#allocation6], 1 }
  0xf6   :  { %158 = vsyncpa [#allocation4], 1 }

</bundles_post_ra>
